<compile_context>
chip_gen: v5e
topology: v5e:2x2
jax: 0.10.0
libtpu: 0.0.40
codegen_flags: <defaults>
</compile_context>

<pallas_src>
import functools

import jax
import jax.numpy as jnp
from jax.experimental import pallas as pl
from jax.experimental.pallas import tpu as pltpu


def _round_up(x, m):
    return (x + m - 1) // m * m


def _rnn_seq_kernel(xproj_ref, h0_ref, w_hid_ref, fused_ref, h_scratch, *, h_pad):
    """One grid step == one timestep of the recurrence.

    xproj_ref : (1, B_pad, HO_pad)  precomputed x_t @ W_in + bias (padded)
    h0_ref    : (B_pad, H_pad)      initial hidden (resident, constant index_map)
    w_hid_ref : (H_pad, HO_pad)     recurrent weight (resident, constant index_map)
    fused_ref : (1, B_pad, HO_pad)  per-step fused [hidden | output] activations
    h_scratch : (B_pad, H_pad)      carried hidden state (VMEM scratch)
    """
    t = pl.program_id(0)

    @pl.when(t == 0)
    def _():
        h_scratch[...] = h0_ref[...]

    fused = xproj_ref[0] + jnp.dot(
        h_scratch[...], w_hid_ref[...], preferred_element_type=jnp.float32
    )
    fused_ref[0] = fused.astype(fused_ref.dtype)          # single lane-dense store
    h_scratch[...] = fused[:, :h_pad]                      # 128-aligned hidden head


def init_params(key, input_size, hidden_size, output_size, dtype=jnp.float32):
    """nn.Linear-style U(-1/sqrt(fan_in), 1/sqrt(fan_in)) init, PyTorch layout."""
    fan_in = input_size + hidden_size
    bound = float(fan_in) ** -0.5
    k1, k2, k3, k4 = jax.random.split(key, 4)
    wh = jax.random.uniform(k1, (hidden_size, fan_in), dtype, -bound, bound)
    bh = jax.random.uniform(k2, (hidden_size,), dtype, -bound, bound)
    wo = jax.random.uniform(k3, (output_size, fan_in), dtype, -bound, bound)
    bo = jax.random.uniform(k4, (output_size,), dtype, -bound, bound)
    return wh, bh, wo, bo


def prepare_params(wh, bh, wo, bo, input_size, *, lane=128):
    """PyTorch-layout params ([out, in]) -> fused, transposed, 128-lane-padded
    kernel layout.  Padded weight/bias columns are exactly zero, so the padded
    lanes of the fused activation are exactly zero and safe to slice off."""
    H = wh.shape[0]
    O = wo.shape[0]
    I = input_size
    H_pad = _round_up(H, lane)
    O_pad = _round_up(O, lane)
    HO_pad = H_pad + O_pad

    w_fused_t = jnp.concatenate([wh, wo], axis=0).T.astype(jnp.float32)  # [I+H, H+O]
    w_in_t = w_fused_t[:I]                                               # [I,   H+O]
    w_hid_t = w_fused_t[I:]                                              # [H,   H+O]

    w_in_pad = jnp.zeros((I, HO_pad), jnp.float32)
    w_in_pad = w_in_pad.at[:, :H].set(w_in_t[:, :H])
    w_in_pad = w_in_pad.at[:, H_pad:H_pad + O].set(w_in_t[:, H:])

    w_hid_pad = jnp.zeros((H_pad, HO_pad), jnp.float32)
    w_hid_pad = w_hid_pad.at[:H, :H].set(w_hid_t[:, :H])
    w_hid_pad = w_hid_pad.at[:H, H_pad:H_pad + O].set(w_hid_t[:, H:])

    bias_pad = jnp.zeros((HO_pad,), jnp.float32)
    bias_pad = bias_pad.at[:H].set(bh.astype(jnp.float32))
    bias_pad = bias_pad.at[H_pad:H_pad + O].set(bo.astype(jnp.float32))

    return dict(w_in_pad=w_in_pad, w_hid_pad=w_hid_pad, bias_pad=bias_pad,
                I=I, H=H, O=O, H_pad=H_pad, O_pad=O_pad, HO_pad=HO_pad)


def rnn_forward_sequence(xs, h0, params):
    """Apply the RNN cell T times inside ONE Pallas kernel.

    xs : [T, B, I], h0 : [B, H]
    returns (outputs [T, B, O], hiddens [T, B, H]); step t equals the torch
    forward applied to (xs[t], hiddens[t-1]).
    """
    T, B, _ = xs.shape
    H, O = params["H"], params["O"]
    H_pad, HO_pad = params["H_pad"], params["HO_pad"]
    I = params["I"]

    B_pad = _round_up(B, 8)  # f32 sublane tile

    xs = xs.astype(jnp.float32)
    h0 = h0.astype(jnp.float32)

    xs_pad = jnp.zeros((T, B_pad, I), jnp.float32).at[:, :B, :].set(xs)
    h0_pad = jnp.zeros((B_pad, H_pad), jnp.float32).at[:B, :H].set(h0)

    # Hoisted, batched input projection over ALL timesteps (one large matmul).
    x_proj = jnp.dot(xs_pad.reshape(T * B_pad, I), params["w_in_pad"],
                     precision=jax.lax.Precision.HIGHEST,
                     preferred_element_type=jnp.float32)
    x_proj = (x_proj + params["bias_pad"]).reshape(T, B_pad, HO_pad)

    kernel = functools.partial(_rnn_seq_kernel, h_pad=H_pad)

    fused_seq = pl.pallas_call(
        kernel,
        out_shape=jax.ShapeDtypeStruct((T, B_pad, HO_pad), jnp.float32),
        grid_spec=pltpu.PrefetchScalarGridSpec(
            num_scalar_prefetch=0,
            grid=(T,),
            in_specs=[
                pl.BlockSpec((1, B_pad, HO_pad), lambda t: (t, 0, 0)),  # x_proj_t
                pl.BlockSpec((B_pad, H_pad), lambda t: (0, 0)),         # h0 (resident)
                pl.BlockSpec((H_pad, HO_pad), lambda t: (0, 0)),        # W_hid (resident)
            ],
            out_specs=pl.BlockSpec((1, B_pad, HO_pad), lambda t: (t, 0, 0)),
            scratch_shapes=[pltpu.VMEM((B_pad, H_pad), jnp.float32)],   # carried hidden
        ),
        compiler_params=pltpu.CompilerParams(
            # Time is a true recurrence -> must stay sequential.
            dimension_semantics=("arbitrary",),
            # vmem_limit_bytes only needed once the resident weight grows large.
        ),
    )(x_proj, h0_pad, params["w_hid_pad"])

    hiddens = fused_seq[:, :B, :H]
    outputs = fused_seq[:, :B, H_pad:H_pad + O]
    return outputs, hiddens


def rnn_forward(inp, hidden, params):
    """Single step with the exact torch forward signature: returns (output, hidden)."""
    outputs, hiddens = rnn_forward_sequence(inp[None], hidden, params)
    return outputs[0], hiddens[0]


if __name__ == "__main__":
    input_size, hidden_size, output_size = 16, 32, 8
    batch, seq = 4, 8

    key = jax.random.PRNGKey(0)
    kx, kh, kp = jax.random.split(key, 3)
    xs = jax.random.normal(kx, (seq, batch, input_size), jnp.float32)
    h0 = jax.random.normal(kh, (batch, hidden_size), jnp.float32)

    wh, bh, wo, bo = init_params(kp, input_size, hidden_size, output_size)
    params = prepare_params(wh, bh, wo, bo, input_size)

    # Sequence path: whole time loop inside one pallas_call.
    outs, hids = rnn_forward_sequence(xs, h0, params)
    jax.block_until_ready((outs, hids))

    # Single-step path (exact module semantics: (input, hidden) -> (output, hidden)).
    out0, hid0 = rnn_forward(xs[0], h0, params)
    jax.block_until_ready((out0, hid0))

    # Plain-JAX reference: apply the torch cell step by step.
    def ref_step(h, x):
        combined = jnp.concatenate([x, h], axis=1)
        new_h = jnp.dot(combined, wh.T, precision=jax.lax.Precision.HIGHEST) + bh
        out = jnp.dot(combined, wo.T, precision=jax.lax.Precision.HIGHEST) + bo
        return new_h, (out, new_h)

    _, (ref_outs, ref_hids) = jax.lax.scan(ref_step, h0, xs)

    assert outs.shape == (seq, batch, output_size)
    assert hids.shape == (seq, batch, hidden_size)
    assert jnp.allclose(outs, ref_outs, atol=1e-4, rtol=1e-4)
    assert jnp.allclose(hids, ref_hids, atol=1e-4, rtol=1e-4)
    assert jnp.allclose(out0, ref_outs[0], atol=1e-4, rtol=1e-4)
    assert jnp.allclose(hid0, ref_hids[0], atol=1e-4, rtol=1e-4)

    print("KERNEL_OK")
</pallas_src>

<mosaic_0001>
module attributes {stable_mosaic.version = 11 : i64} {
  func.func @_rnn_seq_kernel(%arg0: i32, %arg1: memref<1x8x256xf32, #tpu.memory_space<vmem>>, %arg2: memref<8x128xf32, #tpu.memory_space<vmem>>, %arg3: memref<128x256xf32, #tpu.memory_space<vmem>>, %arg4: memref<1x8x256xf32, #tpu.memory_space<vmem>>, %arg5: memref<8x128xf32, #tpu.memory_space<vmem>>) attributes {dimension_semantics = [#tpu.dimension_semantics<arbitrary>], iteration_bounds = array<i64: 8>, scalar_prefetch = 0 : i64, scratch_operands = 1 : i64, tpu.core_type = #tpu.core_type<tc>, window_params = [{transform_indices = @transform_0, window_bounds = array<i64: 1, 8, 256>}, {pipeline_mode = #tpu.pipeline_mode<synchronous>, transform_indices = @transform_1, window_bounds = array<i64: 8, 128>}, {pipeline_mode = #tpu.pipeline_mode<synchronous>, transform_indices = @transform_2, window_bounds = array<i64: 128, 256>}, {transform_indices = @transform_3, window_bounds = array<i64: 1, 8, 256>}]} {
    %c0_i32 = arith.constant 0 : i32
    %0 = arith.cmpi eq, %arg0, %c0_i32 : i32
    %1 = arith.extui %0 : i1 to i32
    %c0_i32_0 = arith.constant 0 : i32
    %2 = arith.cmpi ne, %1, %c0_i32_0 : i32
    scf.if %2 {
      %c0_12 = arith.constant 0 : index
      %c0_13 = arith.constant 0 : index
      %14 = vector.load %arg2[%c0_12, %c0_13] : memref<8x128xf32, #tpu.memory_space<vmem>>, vector<8x128xf32>
      %c0_14 = arith.constant 0 : index
      %c0_15 = arith.constant 0 : index
      %15 = vector.load %arg5[%c0_14, %c0_15] : memref<8x128xf32, #tpu.memory_space<vmem>>, vector<8x128xf32>
      tpu.vector_store %arg5[%c0_14, %c0_15], %14 {strides = array<i32>} : memref<8x128xf32, #tpu.memory_space<vmem>>, vector<8x128xf32>,
    } else {
    }
    %c0 = arith.constant 0 : index
    %c0_1 = arith.constant 0 : index
    %c0_2 = arith.constant 0 : index
    %3 = vector.load %arg1[%c0, %c0_1, %c0_2] : memref<1x8x256xf32, #tpu.memory_space<vmem>>, vector<1x8x256xf32>
    %4 = vector.shape_cast %3 : vector<1x8x256xf32> to vector<8x256xf32>
    %c0_3 = arith.constant 0 : index
    %c0_4 = arith.constant 0 : index
    %5 = vector.load %arg5[%c0_3, %c0_4] : memref<8x128xf32, #tpu.memory_space<vmem>>, vector<8x128xf32>
    %c0_5 = arith.constant 0 : index
    %c0_6 = arith.constant 0 : index
    %6 = vector.load %arg3[%c0_5, %c0_6] : memref<128x256xf32, #tpu.memory_space<vmem>>, vector<128x256xf32>
    %cst = arith.constant dense<0.000000e+00> : vector<8x256xf32>
    %7 = tpu.matmul %5, %6, %cst {dimension_numbers = #tpu.dot_dimension_numbers<[1], [0], [0], [1], [0, 0, 1, 1], [], []>} : vector<8x128xf32>, vector<128x256xf32>, vector<8x256xf32> -> vector<8x256xf32>
    %8 = arith.addf %4, %7 : vector<8x256xf32>
    %c0_7 = arith.constant 0 : index
    %c0_8 = arith.constant 0 : index
    %c0_9 = arith.constant 0 : index
    %9 = vector.load %arg4[%c0_7, %c0_8, %c0_9] : memref<1x8x256xf32, #tpu.memory_space<vmem>>, vector<1x8x256xf32>
    %10 = vector.shape_cast %9 : vector<1x8x256xf32> to vector<8x256xf32>
    %11 = vector.shape_cast %8 : vector<8x256xf32> to vector<1x8x256xf32>
    tpu.vector_store %arg4[%c0_7, %c0_8, %c0_9], %11 {strides = array<i32>} : memref<1x8x256xf32, #tpu.memory_space<vmem>>, vector<1x8x256xf32>,
    %12 = vector.extract_strided_slice %8 {offsets = [0, 0], sizes = [8, 128], strides = [1, 1]} : vector<8x256xf32> to vector<8x128xf32>
    %c0_10 = arith.constant 0 : index
    %c0_11 = arith.constant 0 : index
    %13 = vector.load %arg5[%c0_10, %c0_11] : memref<8x128xf32, #tpu.memory_space<vmem>>, vector<8x128xf32>
    tpu.vector_store %arg5[%c0_10, %c0_11], %12 {strides = array<i32>} : memref<8x128xf32, #tpu.memory_space<vmem>>, vector<8x128xf32>,
    return
  }
  func.func @transform_0(%arg0: i32) -> (i32, i32, i32) {
    %c0_i32 = arith.constant 0 : i32
    %c0_i32_0 = arith.constant 0 : i32
    %c0_i32_1 = arith.constant 0 : i32
    return %arg0, %c0_i32, %c0_i32_0 : i32, i32, i32
  }
  func.func @transform_1(%arg0: i32) -> (i32, i32) {
    %c0_i32 = arith.constant 0 : i32
    %c0_i32_0 = arith.constant 0 : i32
    %c0_i32_1 = arith.constant 0 : i32
    return %c0_i32, %c0_i32_0 : i32, i32
  }
  func.func @transform_2(%arg0: i32) -> (i32, i32) {
    %c0_i32 = arith.constant 0 : i32
    %c0_i32_0 = arith.constant 0 : i32
    %c0_i32_1 = arith.constant 0 : i32
    return %c0_i32, %c0_i32_0 : i32, i32
  }
  func.func @transform_3(%arg0: i32) -> (i32, i32, i32) {
    %c0_i32 = arith.constant 0 : i32
    %c0_i32_0 = arith.constant 0 : i32
    %c0_i32_1 = arith.constant 0 : i32
    return %arg0, %c0_i32, %c0_i32_0 : i32, i32, i32
  }
}

</mosaic_0001>

<bundles_post_ra>
// kernel: tpu_custom_call.1
= control target key start
LH: loop header
LB: loop body
LE: loop exit
PB: predicated region body
PF: predicated region fallthrough
CT: control target
= control target key end

     0   :  { %8 = vsyncpa [#allocation4], 0  ;;  %s839_s0 = inlined_call_operand.hbm [shape: f32[8,8,256], index: 0, kind: input, shape index: {}]   ;;  %s840_s1 = inlined_call_operand.hbm [shape: f32[8,128], index: 1, kind: input, shape index: {}]   ;;  %s841_s2 = inlined_call_operand.hbm [shape: f32[128,256], index: 2, kind: input, shape index: {}]   ;;  %s842_s3 = inlined_call_operand.hbm [shape: f32[8,8,256], index: 3, kind: output, shape index: {}]  }
   0x1   :  { %10 = vsyncpa [#allocation4 + $0x1], 0 }
   0x2   :  { %11 = vsyncpa [#allocation7], 0 }
   0x3   :  { %12 = vsyncpa [#allocation5], 0 }
   0x4   :  { %14 = vsyncpa [#allocation5 + $0x1], 0  ;;  %s688_s12 = smov 0   ;;  %s690_s13 = smov 0  }
   0x5   :  { %s692_s14 = smov 0   ;;  %s694_s15 = smov 0  }
   0x6 LB: > { %s709_s16 = sadd.s32 4294967295, %s662_s15   ;;  %s412_s17 = sadd.s32 4294967294, %s662_s15   ;;  %s662_s15 = sphi %s694_s15, %s852_s15   ;;  %s658_s14 = sphi %s692_s14, %s851_s14   ;;  %s654_s13 = sphi %s690_s13, %s850_s13   ;;  %s650_s12 = sphi %s688_s12, %s849_s12  }
   0x7   : > { %p40_p0 = scmp.ne.s32.totalorder %s654_s13, %s650_s12  ;;  %p41_p1 = scmp.eq.s32.totalorder %s709_s16, 0 }
   0x8   : > { %p106_p2 = scmp.eq.s32.totalorder %s709_s16, 7  ;;  %p112_p3 = scmp.eq.s32.totalorder %s412_s17, 7 }
   0x9   : > { %p718_p4 = por %p41_p1, %p40_p0  ;;  %p413_p5 = scmp.ge.s32.totalorder %s662_s15, 1 }
   0xa   : > { %p723_p6 = por %p112_p3, %p40_p0  ;;  %p119_p7 = scmp.lt.s32.totalorder %s662_s15, 9 }
   0xb   : > { %s131_s22 = sshll.u32 %s840_s1, 4  ;;  %s664_s24 = smov [#allocation6]   ;;  %s132_s22 = int_to_ptr.hbm [resolvable:$true] %s131_s22 }
   0xc   : > { %p732_p9 = pnand %p413_p5, %p119_p7  ;;  %s133_s25 = sshll.u32 %s664_s24, 4  ;;  %s134_s25 = int_to_ptr.vmem [resolvable:$true] %s133_s25 }
   0xd   : > { %s142_s28 = sshll.u32 %s841_s2, 4  ;;  %s665_s29 = smov [#allocation8]   ;;  %s143_s28 = int_to_ptr.hbm [resolvable:$true] %s142_s28 }
   0xe   : > { %p445_p10 = pneg %p732_p9  ;;  %s144_s30 = sshll.u32 %s665_s29, 4  ;;  %s145_s30 = int_to_ptr.vmem [resolvable:$true] %s144_s30 }
   0xf   : > { %s666_s4 = smov 256   ;;  %s667_s5 = smov 16  }
  0x10   : > { %p446_p11 = pnand %p445_p10, %p41_p1  ;;  %s744_s6 = sadd.s32 1, %s662_s15  }
  0x11   : > { %s24_s7 = ssub.s32 %s662_s15, %s744_s6  ;;  %s27_s8 = sadd.s32 1, %s658_s14 }
  0x12   : > { %448 = dma.hbm_to_vmem [thread:$0]  (!%p446_p11), %s132_s22, 128, %s134_s25, [#allocation7]  }
  0x13   : > { %451 = dma.hbm_to_vmem [thread:$0]  (!%p446_p11), %s143_s28, 4096, %s145_s30, [#allocation7], %s666_s4, %s666_s4, %s667_s5  }
  0x14   : > { %p25_p12 = scmp.eq.s32.totalorder %s24_s7, 0  ;;  %p34_p13 = scmp.ne.s32.totalorder %s658_s14, %s654_s13 }
  0x15   : > { %p35_p0 = scmp.eq.s32.totalorder %s662_s15, 0  ;;  %p462_p7 = scmp.lt.s32.totalorder %s662_s15, 8 }
  0x16   : > { %s753_s9 = scalar_select %p25_p12, %s658_s14, %s27_s8  }
  0x17   : > { %p36_p3 = por %p35_p0, %p34_p13  ;;  %p757_p5 = por %p106_p2, %p34_p13 }
  0x18   : > { %s158_s11 = sand.u32 1, %s658_s14   ;;  %s431_s20 = sshll.u32 %s662_s15, 4 }
  0x19   : > { %s417_s17 = sshll.u32 %s158_s11, 4  ;;  %s167_s24 = scalar_lea.hbm %s839_s0, %s431_s20 }
  0x1a   : > { %s162_s25 = scalar_lea.vmem [#allocation3], %s417_s17  ;;  %s169_s27 = sshll.u32 %s167_s24, 4  ;;  %s170_s27 = int_to_ptr.hbm [resolvable:$true] %s169_s27 }
  0x1b   : > { %s171_s26 = sshll.u32 %s162_s25, 4  ;;  %p767_p10 = pnand %p462_p7, %p36_p3  ;;  %s172_s26 = int_to_ptr.vmem [resolvable:$true] %s171_s26 }
  0x1c   : > { %s159_s29 = scalar_lea.sflag [#allocation4], %s158_s11  ;;  %s562_s30 = sshra.s32 %s170_s27, 4  ;;  %s563_s30 = int_to_ptr.hbm [resolvable:$true] %s562_s30 }
  0x1d   : > { %s564_s4 = scalar_lea.hbm %s563_s30, 16  ;;  %p566_p11 = pneg %p767_p10 }
  0x1e   : > { %p565_p2 = scmp.ne.s32.totalorder %s563_s30, %s564_s4  ;;  %s569_s8 = scalar_lea.hbm %s839_s0, 128 }
  0x1f   : > { %p570_p0 = scmp.lt.s32.totalorder %s563_s30, %s839_s0  ;;  %p571_p3 = scmp.lt.s32.totalorder %s569_s8, %s564_s4 }
  0x20   : > { %p567_p12 = pnand %p566_p11, %p565_p2 }
  0x21   : > { %p572_p7 = por %p571_p3, %p570_p0 }
  0x22   : > { %p568_p13 = pneg %p567_p12 }
  0x24   : > { %p573_p8 = pnand %p572_p7, %p568_p13 }
  0x26   : > { %576 = shalt.err (!%p573_p8)
}
  0x27   : > { %455 = dma.hbm_to_vmem [thread:$0]  (!%p767_p10), %s170_s27, 256, %s172_s26, %s159_s29  }
  0x28   : > { %180 = sbr.rel (%p732_p9) target bundleno = 222 (0xde), region = 32  ;;  %s784_s11 = sand.u32 (!%p732_p9), 1, %s654_s13  }
  0x29   : > { %s421_s21 = sshll.u32 (!%p732_p9), %s784_s11, 4  ;;  %s183_s22 = scalar_lea.sflag (!%p732_p9), [#allocation4], %s784_s11 }
  0x2a   : > { %s788_s24 = scalar_lea.vmem (!%p732_p9), [#allocation3], %s421_s21 }
  0x2d   : > { %637 = dma.done.wait (%p718_p4), %s183_s22, 256  }
  0x2e   : > { %639 = vsyncadd (%p718_p4), %s183_s22, 4294967040 }
  0x2f   : > { %641 = dma.done.wait (%p41_p1), [#allocation7], 4224  }
  0x30   : > { %643 = vsyncadd (%p41_p1), [#allocation7], 4294963072  ;;  %s798_s23 = scalar_lea.vmem [#allocation9], %s421_s21  ;;  %p848_p8 = scmp.ne.s32.totalorder %s709_s16, 0 }
  0x32   : > { %223 = sbr.rel (%p848_p8) target bundleno = 57 (0x39), region = 48 }
  0x37   : > { %v224_v0 = vld [vmem:[#allocation6] sm:$0xff] }
  0x38   : > { %225 = vst [vmem:[#allocation2] sm:$0xff] %v224_v0 }
  0x39 PF: > { %v259_v1 = vld [vmem:[#allocation8 + $0xf0] sm:$0xff]  ;;  %v260_v2 = vld [vmem:[#allocation8 + $0xf8] sm:$0xff]  ;;  %v257_v3 = vld [vmem:[#allocation8 + $0xe0] sm:$0xff]  ;;  %s432_s18 = sshll.u32 %s709_s16, 4  ;;  %s320_s28 = sshll.u32 %s798_s23, 4  ;;  %s321_s28 = int_to_ptr.vmem [resolvable:$true] %s320_s28 }
  0x3a   : > { %261 = vmatpush.msra.mxu0 %v259_v1  ;;  %281 = vmatpush.msra.mxu1 %v260_v2  ;;  %v258_v4 = vld [vmem:[#allocation8 + $0xe8] sm:$0xff]  ;;  %v255_v5 = vld [vmem:[#allocation8 + $0xd0] sm:$0xff]  ;;  %v256_v6 = vld [vmem:[#allocation8 + $0xd8] sm:$0xff]  ;;  %s318_s27 = scalar_lea.hbm %s842_s3, %s432_s18  ;;  %s307_s30 = scalar_lea.sflag [#allocation5], %s784_s11 }
  0x3b   : > { %v253_v7 = vld [vmem:[#allocation8 + $0xc0] sm:$0xff]  ;;  %v254_v8 = vld [vmem:[#allocation8 + $0xc8] sm:$0xff]  ;;  %v251_v9 = vld [vmem:[#allocation8 + $0xb0] sm:$0xff]  ;;  %s322_s29 = sshll.u32 %s318_s27, 4  ;;  %s612_s8 = scalar_lea.hbm %s842_s3, 128  ;;  %s323_s29 = int_to_ptr.hbm [resolvable:$true] %s322_s29 }
  0x3c   : > { %262 = vmatpush.msra.mxu0 %v257_v3  ;;  %282 = vmatpush.msra.mxu1 %v258_v4  ;;  %v252_v10 = vld [vmem:[#allocation8 + $0xb8] sm:$0xff]  ;;  %v249_v11 = vld [vmem:[#allocation8 + $0xa0] sm:$0xff]  ;;  %v250_v12 = vld [vmem:[#allocation8 + $0xa8] sm:$0xff]  ;;  %s606_s16 = sshra.s32 %s323_s29, 4  ;;  %s607_s16 = int_to_ptr.hbm [resolvable:$true] %s606_s16 }
  0x3d   : > { %v247_v13 = vld [vmem:[#allocation8 + $0x90] sm:$0xff]  ;;  %v248_v14 = vld [vmem:[#allocation8 + $0x98] sm:$0xff]  ;;  %v245_v15 = vld [vmem:[#allocation8 + $0x80] sm:$0xff]  ;;  %s608_s4 = scalar_lea.hbm %s607_s16, 16  ;;  %p613_p10 = scmp.lt.s32.totalorder %s607_s16, %s842_s3 }
  0x3e   : > { %263 = vmatpush.msra.mxu0 %v255_v5  ;;  %283 = vmatpush.msra.mxu1 %v256_v6  ;;  %v246_v16 = vld [vmem:[#allocation8 + $0x88] sm:$0xff]  ;;  %v243_v17 = vld [vmem:[#allocation8 + $0x70] sm:$0xff]  ;;  %v244_v18 = vld [vmem:[#allocation8 + $0x78] sm:$0xff]  ;;  %p609_p1 = scmp.ne.s32.totalorder %s607_s16, %s608_s4  ;;  %p614_p2 = scmp.lt.s32.totalorder %s612_s8, %s608_s4 }
  0x3f   : > { %v241_v19 = vld [vmem:[#allocation8 + $0x60] sm:$0xff]  ;;  %v242_v20 = vld [vmem:[#allocation8 + $0x68] sm:$0xff]  ;;  %v239_v21 = vld [vmem:[#allocation8 + $0x50] sm:$0xff] }
  0x40   : > { %264 = vmatpush.msra.mxu0 %v253_v7  ;;  %284 = vmatpush.msra.mxu1 %v254_v8  ;;  %v240_v22 = vld [vmem:[#allocation8 + $0x58] sm:$0xff]  ;;  %v237_v23 = vld [vmem:[#allocation8 + $0x40] sm:$0xff]  ;;  %v238_v24 = vld [vmem:[#allocation8 + $0x48] sm:$0xff]  ;;  %p610_p4 = pnand %p609_p1, %p757_p5  ;;  %p615_p11 = por %p614_p2, %p613_p10 }
  0x41   : > { %v235_v25 = vld [vmem:[#allocation8 + $0x30] sm:$0xff]  ;;  %v236_v26 = vld [vmem:[#allocation8 + $0x38] sm:$0xff]  ;;  %v233_v27 = vld [vmem:[#allocation8 + $0x20] sm:$0xff] }
  0x42   : > { %265 = vmatpush.msra.mxu0 %v251_v9  ;;  %285 = vmatpush.msra.mxu1 %v252_v10  ;;  %v234_v28 = vld [vmem:[#allocation8 + $0x28] sm:$0xff]  ;;  %v231_v29 = vld [vmem:[#allocation8 + $0x10] sm:$0xff]  ;;  %v232_v30 = vld [vmem:[#allocation8 + $0x18] sm:$0xff]  ;;  %p611_p9 = pneg %p610_p4 }
  0x43   : > { %v229_v31 = vld [vmem:[#allocation8] sm:$0xff]  ;;  %v230_v32 = vld [vmem:[#allocation8 + $0x8] sm:$0xff]  ;;  %v228_v33 = vld [vmem:[#allocation2] sm:$0xff] }
  0x44   : > { %266 = vmatpush.msra.mxu0 %v249_v11  ;;  %286 = vmatpush.msra.mxu1 %v250_v12  ;;  %v226_v34 = vld [vmem:[%s788_s24] sm:$0xff]  ;;  %v227_v35 = vld [vmem:[%s788_s24 + $0x8] sm:$0xff]  ;;  %p616_p12 = pnand %p615_p11, %p611_p9 }
  0x46   : > { %267 = vmatpush.msra.mxu0 %v247_v13  ;;  %287 = vmatpush.msra.mxu1 %v248_v14 }
  0x48   : > { %268 = vmatpush.msra.mxu0 %v245_v15  ;;  %288 = vmatpush.msra.mxu1 %v246_v16 }
  0x4a   : > { %269 = vmatpush.msra.mxu0 %v243_v17  ;;  %289 = vmatpush.msra.mxu1 %v244_v18 }
  0x4c   : > { %270 = vmatpush.msra.mxu0 %v241_v19  ;;  %290 = vmatpush.msra.mxu1 %v242_v20 }
  0x4e   : > { %271 = vmatpush.msra.mxu0 %v239_v21  ;;  %291 = vmatpush.msra.mxu1 %v240_v22 }
  0x50   : > { %272 = vmatpush.msra.mxu0 %v237_v23  ;;  %292 = vmatpush.msra.mxu1 %v238_v24 }
  0x52   : > { %273 = vmatpush.msra.mxu0 %v235_v25  ;;  %293 = vmatpush.msra.mxu1 %v236_v26 }
  0x54   : > { %274 = vmatpush.msra.mxu0 %v233_v27  ;;  %294 = vmatpush.msra.mxu1 %v234_v28 }
  0x56   : > { %275 = vmatpush.msra.mxu0 %v231_v29  ;;  %295 = vmatpush.msra.mxu1 %v232_v30 }
  0x58   : > { %276 = vmatpush.msra.mxu0 %v229_v31  ;;  %296 = vmatpush.msra.mxu1 %v230_v32 }
  0x59   : > { %277 = vmatmul.f32.vlgmr.msra.gmra.mxu0 %v228_v33  ;;  %297 = vmatmul.f32.vlgmr.msra.gmra.mxu1 %v228_v33 }
  0xd6   : > { %v278_v36 = vpop.f32.mrf.mxu0  ;;  %v298_v37 = vpop.f32.mrf.mxu1 }
  0xd7   : > { %v301_v38 = vadd.f32 %v278_v36, %v226_v34  ;;  %v302_v39 = vadd.f32 %v298_v37, %v227_v35 }
  0xd9   : > { %303 = vst [vmem:[%s798_s23] sm:$0xff] %v301_v38 }
  0xda   : > { %305 = vst [vmem:[#allocation2] sm:$0xff] %v301_v38 }
  0xdb   : > { %304 = vst [vmem:[%s798_s23 + $0x8] sm:$0xff] %v302_v39 }
  0xdc   : > { %619 = shalt.err (!%p616_p12)
}
  0xdd   : > { %443 = dma.vmem_to_hbm [thread:$0]  (%p757_p5), %s321_s28, 256, %s323_s29, %s307_s30  }
  0xde PF: > { %p465_p13 = scmp.ge.s32.totalorder %s662_s15, 2  ;;  %s334_s11 = sand.u32 1, %s650_s12  }
  0xdf   : > { %s335_s21 = scalar_lea.sflag [#allocation5], %s334_s11 }
  0xe0   : > { %p457_p0 = pnand %p465_p13, %p723_p6 }
  0xe2   : > { %p458_p3 = pneg %p457_p0 }
  0xe4   : > { %645 = dma.done.wait (%p458_p3), %s335_s21, 256  }
  0xe5   : > { %647 = vsyncadd (%p458_p3), %s335_s21, 4294967040  ;;  %p17_p7 = scmp.ge.s32.totalorder %s744_s6, 10   ;;  %s849_s12 = smov %s654_s13 }
  0xe6   : > { %s850_s13 = smov %s658_s14  ;;  %s851_s14 = smov %s753_s9 }
  0xe7   : > { %s852_s15 = smov %s744_s6  ;;  %19 = sbr.rel (!%p17_p7) target bundleno = 6 (0x6), region = 89 }
  0xec   :  { %341 = vsyncpa [#allocation4], 1 }
  0xed   :  { %343 = vsyncpa [#allocation4 + $0x1], 1 }
  0xee   :  { %344 = vsyncpa [#allocation7], 1 }
  0xef   :  { %345 = vsyncpa [#allocation5], 1 }
  0xf0   :  { %347 = vsyncpa [#allocation5 + $0x1], 1 }

</bundles_post_ra>
